<compile_context>
chip_gen: v6e
topology: v6e:2x2x1
jax: 0.10.0
libtpu: 0.0.40
codegen_flags: <defaults>
</compile_context>

<pallas_src>
import jax
import jax.numpy as jnp
from jax.experimental import pallas as pl
from jax.experimental.pallas import tpu as pltpu

BN_EPS = 1e-5


# ----------------------------------------------------------------------------
# Parameter handling
# ----------------------------------------------------------------------------
def init_params(key, input_dim=10, hidden_dims=(10, 20), output_dim=3):
    """Deterministic synthetic parameters matching ImprovedMLP's shapes.

    Linear weights are stored as [in, out] (transposed vs PyTorch's [out, in]);
    biases / BN vectors are stored as [1, features].
    """
    ks = jax.random.split(key, 16)
    h1, h2 = hidden_dims

    def lin(kw, kb, din, dout):
        bound = 1.0 / jnp.sqrt(jnp.float32(din))
        w = jax.random.uniform(kw, (din, dout), jnp.float32, -bound, bound)
        b = jax.random.uniform(kb, (1, dout), jnp.float32, -bound, bound)
        return w, b

    w1, b1 = lin(ks[0], ks[1], input_dim, h1)
    w2, b2 = lin(ks[2], ks[3], h1, h2)
    w3, b3 = lin(ks[4], ks[5], h2, output_dim)

    def bn(kg, kb, km, kv, dim):
        gamma = 1.0 + 0.1 * jax.random.normal(kg, (1, dim), jnp.float32)
        beta = 0.1 * jax.random.normal(kb, (1, dim), jnp.float32)
        mean = 0.1 * jax.random.normal(km, (1, dim), jnp.float32)
        var = jax.nn.softplus(jax.random.normal(kv, (1, dim), jnp.float32)) + 0.5
        return gamma, beta, mean, var

    g1, be1, m1, v1 = bn(ks[6], ks[7], ks[8], ks[9], h1)
    g2, be2, m2, v2 = bn(ks[10], ks[11], ks[12], ks[13], h2)

    return (w1, b1, g1, be1, m1, v1,
            w2, b2, g2, be2, m2, v2,
            w3, b3)


def fold_params(params):
    """Fold eval-mode BatchNorms into the following Linear layers (in f32).

    BN(h) = s*h + t with s = gamma*rsqrt(var+eps), t = beta - mean*s, so
    BN(h) @ W + b == h @ (s^T * W) + (t @ W + b).
    Returns (w1, b1, w2f, b2f, w3f, b3f) with weights as [in, out].
    """
    (w1, b1, g1, be1, m1, v1,
     w2, b2, g2, be2, m2, v2,
     w3, b3) = params

    s1 = g1 * jax.lax.rsqrt(v1 + BN_EPS)       # [1, h1]
    t1 = be1 - m1 * s1                         # [1, h1]
    s2 = g2 * jax.lax.rsqrt(v2 + BN_EPS)       # [1, h2]
    t2 = be2 - m2 * s2                         # [1, h2]

    w2f = w2 * s1.reshape(-1, 1)               # scale rows of [h1, h2]
    b2f = b2 + t1 @ w2                         # [1, h2]
    w3f = w3 * s2.reshape(-1, 1)               # scale rows of [h2, out]
    b3f = b3 + t2 @ w3                         # [1, out]

    return w1, b1, w2f, b2f, w3f, b3f


def _round_up(x, m):
    return ((x + m - 1) // m) * m


# ----------------------------------------------------------------------------
# Pallas kernel + wrapper
# ----------------------------------------------------------------------------
def improved_mlp_forward(x, folded_params, *, max_batch_tile=4096, min_split=512):
    """x: [B, input_dim] float32. Returns [B, output_dim] float32.

    folded_params = (w1, b1, w2, b2, w3, b3) from fold_params().
    """
    w1, b1, w2, b2, w3, b3 = folded_params
    B, in_dim = x.shape
    h1 = w1.shape[1]
    h2 = w2.shape[1]
    out_dim = w3.shape[1]

    # ---- batch tiling ------------------------------------------------------
    # No wrapper-side padding: the grid is cdiv(B, tile); Pallas masks the
    # ragged last block (rows are independent, so tail garbage reads only feed
    # output rows that are never written back).
    if B <= min_split:
        # Single tile (block_shape equals the full array dim, so the 8-sublane
        # divisibility rule does not apply).
        batch_tile = B
    else:
        # Even grid >= 2 so v7x's two TensorCores both get work; tile capped
        # at max_batch_tile (~16 MiB of lane-padded VMEM at 4096 rows).
        num_tiles = max(2, pl.cdiv(B, max_batch_tile))
        if num_tiles % 2:
            num_tiles += 1
        batch_tile = _round_up(pl.cdiv(B, num_tiles), 8)
    grid = (pl.cdiv(B, batch_tile),)

    def kernel(x_ref, w1_ref, w2_ref, w3_ref, b1_ref, b2_ref, b3_ref, o_ref):
        xb = x_ref[...]

        # block 1: Linear + ReLU (BN1 / Dropout folded / identity)
        h = jnp.dot(xb, w1_ref[...], preferred_element_type=jnp.float32)
        h = jnp.maximum(h + b1_ref[...], 0.0)

        # block 2: Linear (BN1 folded in) + ReLU (BN2 / Dropout folded / identity)
        h = jnp.dot(h, w2_ref[...], preferred_element_type=jnp.float32)
        h = jnp.maximum(h + b2_ref[...], 0.0)

        # output layer: Linear (BN2 folded in)
        o = jnp.dot(h, w3_ref[...], preferred_element_type=jnp.float32)
        o_ref[...] = (o + b3_ref[...]).astype(o_ref.dtype)

    def const_spec(shape):
        # full (untiled) parameter, constant block index across the grid
        return pl.BlockSpec(shape, lambda i: (0, 0))

    flops = 2 * B * (in_dim * h1 + h1 * h2 + h2 * out_dim)
    bytes_accessed = (
        B * in_dim * x.dtype.itemsize
        + B * out_dim * 4
        + sum(int(a.size) * a.dtype.itemsize for a in (w1, w2, w3, b1, b2, b3))
    )

    return pl.pallas_call(
        kernel,
        out_shape=jax.ShapeDtypeStruct((B, out_dim), jnp.float32),
        grid_spec=pltpu.PrefetchScalarGridSpec(
            num_scalar_prefetch=0,
            grid=grid,
            in_specs=[
                pl.BlockSpec((batch_tile, in_dim), lambda i: (i, 0)),  # x tile
                const_spec(w1.shape),
                const_spec(w2.shape),
                const_spec(w3.shape),
                const_spec(b1.shape),
                const_spec(b2.shape),
                const_spec(b3.shape),
            ],
            out_specs=pl.BlockSpec((batch_tile, out_dim), lambda i: (i, 0)),
        ),
        compiler_params=pltpu.CompilerParams(
            dimension_semantics=("parallel",),
            # 4096-row tiles have a lane-padded working set of ~16 MiB; raise
            # the scoped VMEM limit so v5e (16 MiB default) / v6e (32 MiB)
            # don't shrink buffering, while staying well under v7x's 64 MiB.
            vmem_limit_bytes=48 * 1024 * 1024,
        ),
        cost_estimate=pl.CostEstimate(
            flops=int(flops),
            transcendentals=0,
            bytes_accessed=int(bytes_accessed),
        ),
    )(x, w1, w2, w3, b1, b2, b3)


# ----------------------------------------------------------------------------
# Plain-JAX reference (unfolded, eval-mode) for verification
# ----------------------------------------------------------------------------
def reference_forward(x, params):
    (w1, b1, g1, be1, m1, v1,
     w2, b2, g2, be2, m2, v2,
     w3, b3) = params
    h = jnp.maximum(x @ w1 + b1, 0.0)
    h = (h - m1) * jax.lax.rsqrt(v1 + BN_EPS) * g1 + be1
    h = jnp.maximum(h @ w2 + b2, 0.0)
    h = (h - m2) * jax.lax.rsqrt(v2 + BN_EPS) * g2 + be2
    return h @ w3 + b3


if __name__ == "__main__":
    key = jax.random.PRNGKey(0)
    kx, kp, kx2 = jax.random.split(key, 3)

    B, INPUT_DIM = 32, 10
    x = jax.random.normal(kx, (B, INPUT_DIM), jnp.float32)
    raw_params = init_params(kp, input_dim=INPUT_DIM, hidden_dims=(10, 20), output_dim=3)
    folded = fold_params(raw_params)

    # Small batch: single tile, grid of 1.
    out = jax.block_until_ready(improved_mlp_forward(x, folded))
    ref = reference_forward(x, raw_params)
    assert out.shape == (B, 3)
    assert jnp.allclose(out, ref, atol=1e-4, rtol=1e-4), "mismatch vs JAX reference (B=32)"

    # Larger, non-multiple batch: even grid of 2 with a ragged (masked) tail block.
    B2 = 1037
    x2 = jax.random.normal(kx2, (B2, INPUT_DIM), jnp.float32)
    out2 = jax.block_until_ready(improved_mlp_forward(x2, folded))
    ref2 = reference_forward(x2, raw_params)
    assert out2.shape == (B2, 3)
    assert jnp.allclose(out2, ref2, atol=1e-4, rtol=1e-4), "mismatch vs JAX reference (B=1037)"

    print("KERNEL_OK")
</pallas_src>

<mosaic_0001>
module attributes {stable_mosaic.version = 11 : i64} {
  func.func @kernel(%arg0: i32, %arg1: memref<32x10xf32, #tpu.memory_space<vmem>>, %arg2: memref<10x10xf32, #tpu.memory_space<vmem>>, %arg3: memref<10x20xf32, #tpu.memory_space<vmem>>, %arg4: memref<20x3xf32, #tpu.memory_space<vmem>>, %arg5: memref<1x10xf32, #tpu.memory_space<vmem>>, %arg6: memref<1x20xf32, #tpu.memory_space<vmem>>, %arg7: memref<1x3xf32, #tpu.memory_space<vmem>>, %arg8: memref<32x3xf32, #tpu.memory_space<vmem>>) attributes {dimension_semantics = [#tpu.dimension_semantics<parallel>], iteration_bounds = array<i64: 1>, scalar_prefetch = 0 : i64, scratch_operands = 0 : i64, tpu.core_type = #tpu.core_type<tc>, window_params = [{transform_indices = @transform_0, window_bounds = array<i64: 32, 10>}, {pipeline_mode = #tpu.pipeline_mode<synchronous>, transform_indices = @transform_1, window_bounds = array<i64: 10, 10>}, {pipeline_mode = #tpu.pipeline_mode<synchronous>, transform_indices = @transform_2, window_bounds = array<i64: 10, 20>}, {pipeline_mode = #tpu.pipeline_mode<synchronous>, transform_indices = @transform_3, window_bounds = array<i64: 20, 3>}, {pipeline_mode = #tpu.pipeline_mode<synchronous>, transform_indices = @transform_4, window_bounds = array<i64: 1, 10>}, {pipeline_mode = #tpu.pipeline_mode<synchronous>, transform_indices = @transform_5, window_bounds = array<i64: 1, 20>}, {pipeline_mode = #tpu.pipeline_mode<synchronous>, transform_indices = @transform_6, window_bounds = array<i64: 1, 3>}, {transform_indices = @transform_7, window_bounds = array<i64: 32, 3>}]} {
    %c0 = arith.constant 0 : index
    %c0_0 = arith.constant 0 : index
    %0 = vector.load %arg1[%c0, %c0_0] : memref<32x10xf32, #tpu.memory_space<vmem>>, vector<32x10xf32>
    %c0_1 = arith.constant 0 : index
    %c0_2 = arith.constant 0 : index
    %1 = vector.load %arg2[%c0_1, %c0_2] : memref<10x10xf32, #tpu.memory_space<vmem>>, vector<10x10xf32>
    %cst = arith.constant dense<0.000000e+00> : vector<32x10xf32>
    %2 = tpu.matmul %0, %1, %cst {dimension_numbers = #tpu.dot_dimension_numbers<[1], [0], [0], [1], [0, 0, 1, 1], [], []>} : vector<32x10xf32>, vector<10x10xf32>, vector<32x10xf32> -> vector<32x10xf32>
    %c0_3 = arith.constant 0 : index
    %c0_4 = arith.constant 0 : index
    %3 = vector.load %arg5[%c0_3, %c0_4] : memref<1x10xf32, #tpu.memory_space<vmem>>, vector<1x10xf32>
    %4 = vector.broadcast %3 : vector<1x10xf32> to vector<32x10xf32>
    %5 = arith.addf %2, %4 : vector<32x10xf32>
    %cst_5 = arith.constant 0.000000e+00 : f32
    %6 = vector.broadcast %cst_5 : f32 to vector<32x10xf32>
    %7 = arith.maximumf %5, %6 : vector<32x10xf32>
    %c0_6 = arith.constant 0 : index
    %c0_7 = arith.constant 0 : index
    %8 = vector.load %arg3[%c0_6, %c0_7] : memref<10x20xf32, #tpu.memory_space<vmem>>, vector<10x20xf32>
    %cst_8 = arith.constant dense<0.000000e+00> : vector<32x20xf32>
    %9 = tpu.matmul %7, %8, %cst_8 {dimension_numbers = #tpu.dot_dimension_numbers<[1], [0], [0], [1], [0, 0, 1, 1], [], []>} : vector<32x10xf32>, vector<10x20xf32>, vector<32x20xf32> -> vector<32x20xf32>
    %c0_9 = arith.constant 0 : index
    %c0_10 = arith.constant 0 : index
    %10 = vector.load %arg6[%c0_9, %c0_10] : memref<1x20xf32, #tpu.memory_space<vmem>>, vector<1x20xf32>
    %11 = vector.broadcast %10 : vector<1x20xf32> to vector<32x20xf32>
    %12 = arith.addf %9, %11 : vector<32x20xf32>
    %cst_11 = arith.constant 0.000000e+00 : f32
    %13 = vector.broadcast %cst_11 : f32 to vector<32x20xf32>
    %14 = arith.maximumf %12, %13 : vector<32x20xf32>
    %c0_12 = arith.constant 0 : index
    %c0_13 = arith.constant 0 : index
    %15 = vector.load %arg4[%c0_12, %c0_13] : memref<20x3xf32, #tpu.memory_space<vmem>>, vector<20x3xf32>
    %cst_14 = arith.constant dense<0.000000e+00> : vector<32x3xf32>
    %16 = tpu.matmul %14, %15, %cst_14 {dimension_numbers = #tpu.dot_dimension_numbers<[1], [0], [0], [1], [0, 0, 1, 1], [], []>} : vector<32x20xf32>, vector<20x3xf32>, vector<32x3xf32> -> vector<32x3xf32>
    %c0_15 = arith.constant 0 : index
    %c0_16 = arith.constant 0 : index
    %17 = vector.load %arg7[%c0_15, %c0_16] : memref<1x3xf32, #tpu.memory_space<vmem>>, vector<1x3xf32>
    %18 = vector.broadcast %17 : vector<1x3xf32> to vector<32x3xf32>
    %19 = arith.addf %16, %18 : vector<32x3xf32>
    %c0_17 = arith.constant 0 : index
    %c0_18 = arith.constant 0 : index
    %20 = vector.load %arg8[%c0_17, %c0_18] : memref<32x3xf32, #tpu.memory_space<vmem>>, vector<32x3xf32>
    tpu.vector_store %arg8[%c0_17, %c0_18], %19 {strides = array<i32>} : memref<32x3xf32, #tpu.memory_space<vmem>>, vector<32x3xf32>,
    return
  }
  func.func @transform_0(%arg0: i32) -> (i32, i32) {
    %c0_i32 = arith.constant 0 : i32
    %c0_i32_0 = arith.constant 0 : i32
    return %arg0, %c0_i32 : i32, i32
  }
  func.func @transform_1(%arg0: i32) -> (i32, i32) {
    %c0_i32 = arith.constant 0 : i32
    %c0_i32_0 = arith.constant 0 : i32
    %c0_i32_1 = arith.constant 0 : i32
    return %c0_i32, %c0_i32_0 : i32, i32
  }
  func.func @transform_2(%arg0: i32) -> (i32, i32) {
    %c0_i32 = arith.constant 0 : i32
    %c0_i32_0 = arith.constant 0 : i32
    %c0_i32_1 = arith.constant 0 : i32
    return %c0_i32, %c0_i32_0 : i32, i32
  }
  func.func @transform_3(%arg0: i32) -> (i32, i32) {
    %c0_i32 = arith.constant 0 : i32
    %c0_i32_0 = arith.constant 0 : i32
    %c0_i32_1 = arith.constant 0 : i32
    return %c0_i32, %c0_i32_0 : i32, i32
  }
  func.func @transform_4(%arg0: i32) -> (i32, i32) {
    %c0_i32 = arith.constant 0 : i32
    %c0_i32_0 = arith.constant 0 : i32
    %c0_i32_1 = arith.constant 0 : i32
    return %c0_i32, %c0_i32_0 : i32, i32
  }
  func.func @transform_5(%arg0: i32) -> (i32, i32) {
    %c0_i32 = arith.constant 0 : i32
    %c0_i32_0 = arith.constant 0 : i32
    %c0_i32_1 = arith.constant 0 : i32
    return %c0_i32, %c0_i32_0 : i32, i32
  }
  func.func @transform_6(%arg0: i32) -> (i32, i32) {
    %c0_i32 = arith.constant 0 : i32
    %c0_i32_0 = arith.constant 0 : i32
    %c0_i32_1 = arith.constant 0 : i32
    return %c0_i32, %c0_i32_0 : i32, i32
  }
  func.func @transform_7(%arg0: i32) -> (i32, i32) {
    %c0_i32 = arith.constant 0 : i32
    %c0_i32_0 = arith.constant 0 : i32
    return %arg0, %c0_i32 : i32, i32
  }
}

</mosaic_0001>

<bundles_post_ra>
// kernel: tpu_custom_call.1
= control target key start
LH: loop header
LB: loop body
LE: loop exit
PB: predicated region body
PF: predicated region fallthrough
CT: control target
= control target key end

     0   :  { %vm52_vm0 = vcmask 1041408   ;;  %vm39_vm1 = vcmask 80896   ;;  %vm281_vm2 = vcmask 1043456   ;;  %vm268_vm3 = vcmask 162816   ;;  %s560_s1 = inlined_call_operand.vmem [shape: f32[10,10], index: 1, kind: input, shape index: {}]   ;;  %s561_s0 = inlined_call_operand.vmem [shape: f32[32,10], index: 0, kind: input, shape index: {}]   ;;  %s562_s2 = inlined_call_operand.vmem [shape: f32[10,20], index: 2, kind: input, shape index: {}]   ;;  %s563_s4 = inlined_call_operand.vmem [shape: f32[1,10], index: 4, kind: input, shape index: {}]   ;;  %s564_s3 = inlined_call_operand.vmem [shape: f32[20,3], index: 3, kind: input, shape index: {}]   ;;  %s565_s5 = inlined_call_operand.vmem [shape: f32[1,20], index: 5, kind: input, shape index: {}]   ;;  %s566_s6 = inlined_call_operand.vmem [shape: f32[1,3], index: 6, kind: input, shape index: {}]   ;;  %s567_s7 = inlined_call_operand.vmem [shape: f32[32,3], index: 7, kind: output, shape index: {}]  }
   0x1   :  { %v31_v0 = vld [vmem:[%s560_s1 + $0x8] sm:$0x3]  ;;  %v30_v1 = vld [vmem:[%s560_s1] sm:$0xff]  ;;  %v28_v4 = vld [vmem:[%s561_s0 + $0x10] sm:$0xff]  ;;  %vm370_vm4 = vcmask 23552  }
   0x2   :  { %v26_v2 = vld [vmem:[%s561_s0] sm:$0xff]  ;;  %416 = vmatprep.subr.msk.mxu0 %vm52_vm0, %v31_v0  ;;  %v27_v3 = vld [vmem:[%s561_s0 + $0x8] sm:$0xff]  ;;  %v29_v5 = vld [vmem:[%s561_s0 + $0x18] sm:$0xff] }
   0x3   :  { %420 = vmatprep.mubr.msk.f32.mxu0 %vm39_vm1, %v26_v2  ;;  %417 = vmatpush3.msk.msra.mxu0 %vm52_vm0, %v31_v0  ;;  %v146_v6 = vld [vmem:[%s562_s2 + $0x8] sm:$0x3]  ;;  %v145_v7 = vld [vmem:[%s562_s2] sm:$0xff]  ;;  %v260_v21 = vld [vmem:[%s564_s3 + $0x10] sm:$0xf] }
   0x4   :  { %418 = vmatprep.subr.mxu0 %v30_v1  ;;  %426 = vmatprep.subr.msk.mxu1 %vm52_vm0, %v146_v6  ;;  %v379_v8 = vld [vmem:[%s563_s4] ss:$0 sm:$0xff]  ;;  %v259_v22 = vld [vmem:[%s564_s3 + $0x8] sm:$0xff] }
   0x5   :  { %419 = vmatpush3.msra.mxu0 %v30_v1  ;;  %427 = vmatpush3.msk.msra.mxu1 %vm52_vm0, %v146_v6  ;;  %v258_v23 = vld [vmem:[%s564_s3] sm:$0xff] }
   0x6   :  { %421 = vmatmul.mubr.msk.f32.vlgmr.msra.gmra.mxu0 %vm39_vm1, %v27_v3  ;;  %428 = vmatprep.subr.mxu1 %v145_v7  ;;  %v385_v24 = vld [vmem:[%s565_s5] ss:$0 sm:$0xff] }
   0x7   :  { %423 = vmatprep.mubr.msk.f32.mxu0 %vm39_vm1, %v28_v4  ;;  %429 = vmatpush3.msra.mxu1 %v145_v7  ;;  %v391_v37 = vld [vmem:[%s566_s6] ss:$0 sm:$0xff] }
   0x8   :  { %436 = vmatprep.subr.msk.mxu0 %vm281_vm2, %v260_v21  ;;  %448 = vmatprep.subr.msk.mxu1 %vm281_vm2, %v260_v21 }
   0x9   :  { %437 = vmatpush3.msk.msra.mxu0 %vm281_vm2, %v260_v21 }
   0xa   :  { %424 = vmatmul.mubr.msk.f32.gmra.mxu0 %vm39_vm1, %v29_v5  ;;  %438 = vmatprep.subr.mxu0 %v259_v22 }
   0xb   :  { %439 = vmatpush3.msra.mxu0 %v259_v22 }
   0xc   :  { %440 = vmatprep.subr.mxu0 %v258_v23 }
   0xd   :  { %441 = vmatpush3.msra.mxu0 %v258_v23 }
  0xc6   :  { %v422_v9 = vpop.f32.mrf.mxu0 }
  0xc7   :  { %v128_v10 = vadd.f32 %v422_v9, %v379_v8 }
  0xc8   :  { %v122_v11 = vpop.f32.mrf.mxu0 }
  0xc9   :  { %v123_v12 = vadd.f32 %v379_v8, %v122_v11  ;;  %v142_v15 = vmax.f32 %v128_v10, 0.0 }
  0xca   :  { %v425_v13 = vpop.f32.mrf.mxu0 }
  0xcb   :  { %v141_v14 = vmax.f32 %v123_v12, 0.0  ;;  %v138_v16 = vadd.f32 %v425_v13, %v379_v8 }
  0xcc   :  { %v132_v17 = vpop.f32.mrf.mxu0 }
  0xcd   :  { %v133_v18 = vadd.f32 %v379_v8, %v132_v17  ;;  %430 = vmatprep.mubr.msk.f32.mxu1 %vm39_vm1, %v141_v14  ;;  %v144_v20 = vmax.f32 %v138_v16, 0.0 }
  0xce   :  { %431 = vmatmul.mubr.msk.f32.vlgmr.msra.gmra.mxu1 %vm39_vm1, %v142_v15 }
  0xcf   :  { %v143_v19 = vmax.f32 %v133_v18, 0.0  ;;  %451 = vmatpush3.msk.msra.mxu1 %vm281_vm2, %v260_v21 }
  0xd0   :  { %449 = vmatprep.subr.mxu1 %v259_v22 }
  0xd1   :  { %433 = vmatprep.mubr.msk.f32.mxu1 %vm39_vm1, %v143_v19  ;;  %452 = vmatpush3.msra.mxu1 %v259_v22 }
  0xd2   :  { %434 = vmatmul.mubr.msk.f32.gmra.mxu1 %vm39_vm1, %v144_v20  ;;  %450 = vmatprep.subr.mxu1 %v258_v23 }
  0xd3   :  { %453 = vmatpush3.msra.mxu1 %v258_v23 }
 0x18e   :  { %v432_v25 = vpop.f32.mrf.mxu1 }
 0x18f   :  { %v241_v26 = vadd.f32 %v432_v25, %v385_v24 }
 0x190   :  { %v235_v27 = vpop.f32.mrf.mxu1 }
 0x191   :  { %v236_v28 = vadd.f32 %v385_v24, %v235_v27  ;;  %v255_v31 = vmax.f32 %v241_v26, 0.0 }
 0x192   :  { %v435_v29 = vpop.f32.mrf.mxu1 }
 0x193   :  { %v254_v30 = vmax.f32 %v236_v28, 0.0  ;;  %v251_v32 = vadd.f32 %v435_v29, %v385_v24 }
 0x194   :  { %v245_v33 = vpop.f32.mrf.mxu1 }
 0x195   :  { %v246_v34 = vadd.f32 %v385_v24, %v245_v33  ;;  %442 = vmatprep.mubr.msk.f32.mxu0 %vm268_vm3, %v254_v30  ;;  %v257_v36 = vmax.f32 %v251_v32, 0.0 }
 0x196   :  { %443 = vmatmul.mubr.msk.f32.vlgmr.msra.gmra.mxu0 %vm268_vm3, %v255_v31 }
 0x197   :  { %v256_v35 = vmax.f32 %v246_v34, 0.0 }
 0x199   :  { %445 = vmatprep.mubr.msk.f32.mxu1 %vm268_vm3, %v256_v35 }
 0x19a   :  { %446 = vmatmul.mubr.msk.f32.vlgmr.msra.gmra.mxu1 %vm268_vm3, %v257_v36 }
 0x256   :  { %v444_v38 = vpop.f32.mrf.mxu0 }
 0x257   :  { %v357_v39 = vadd.f32 %v444_v38, %v391_v37 }
 0x258   :  { %v351_v40 = vpop.f32.mrf.mxu0 }
 0x259   :  { %372 = vst.msk [vmem:[%s567_s7 + $0x8] sm:$0xff] %vm370_vm4, %v357_v39  ;;  %v352_v41 = vadd.f32 %v391_v37, %v351_v40 }
 0x25a   :  { %v447_v42 = vpop.f32.mrf.mxu1 }
 0x25b   :  { %371 = vst.msk [vmem:[%s567_s7] sm:$0xff] %vm370_vm4, %v352_v41  ;;  %v367_v43 = vadd.f32 %v447_v42, %v391_v37 }
 0x25c   :  { %v361_v44 = vpop.f32.mrf.mxu1 }
 0x25d   :  { %374 = vst.msk [vmem:[%s567_s7 + $0x18] sm:$0xff] %vm370_vm4, %v367_v43  ;;  %v362_v45 = vadd.f32 %v391_v37, %v361_v44 }
 0x25f   :  { %373 = vst.msk [vmem:[%s567_s7 + $0x10] sm:$0xff] %vm370_vm4, %v362_v45 }

</bundles_post_ra>
